<compile_context>
chip_gen: v7x
topology: tpu7x:2x2x1
jax: 0.10.0
libtpu: 0.0.40
codegen_flags: <defaults>
</compile_context>

<pallas_src>
import math

import jax
import jax.numpy as jnp
from jax import lax
from jax.experimental import pallas as pl
from jax.experimental.pallas import tpu as pltpu  # noqa: F401  (TPU backend)

# ---- config (mirrors the fields RWKV_TinyAttn reads from `config`) ----------
N_EMBD = 32          # config.n_embd
D_ATTN = 16          # config.rwkv_tiny_attn
N_HEAD = 2           # config.rwkv_tiny_head
HEAD_SIZE = D_ATTN // N_HEAD
B = 2
T = 8


def tiny_attn_kernel(x_ref, bias_ref, qkv_pack_ref, out_pack_ref, o_ref):
    """Single invocation: processes all B*T rows at once.

    x_ref        : (BT, C)            bf16
    bias_ref     : (BT, BT)           f32   block-diagonal additive mask
    qkv_pack_ref : (C + 1, 3*D_ATTN)  bf16  rows [0:C] = W_qkv^T (q scaled),
                                            row  [C]   = b_qkv  (q scaled)
    out_pack_ref : (D_ATTN + 1, C)    bf16  rows [0:D] = W_out^T, row [D] = b_out
    o_ref        : (BT, C)            f32
    """
    BT, C = x_ref.shape
    d3 = qkv_pack_ref.shape[1]          # 3 * D_ATTN
    d_attn = d3 // 3
    head_size = d_attn // N_HEAD

    x = x_ref[...]                      # (BT, C) bf16
    bias = bias_ref[...]                # (BT, BT) f32

    w_qkv = qkv_pack_ref[:C, :]         # (C, 3*D) bf16
    b_qkv = qkv_pack_ref[C:C + 1, :]    # (1, 3*D) bf16

    # One fused QKV projection: single MXU push, 48-lane-wide output.
    qkv = jnp.dot(x, w_qkv, preferred_element_type=jnp.float32) + b_qkv  # (BT, 3D) f32

    heads = []
    for h in range(N_HEAD):             # static, fully unrolled (N_HEAD = 2)
        lo = h * head_size
        hi = (h + 1) * head_size
        q = qkv[:, 0 * d_attn + lo:0 * d_attn + hi]          # (BT, HS) f32, scale folded
        k = qkv[:, 1 * d_attn + lo:1 * d_attn + hi]
        v = qkv[:, 2 * d_attn + lo:2 * d_attn + hi]

        # s = q @ k^T over the flattened batch axis; contracting dim 1 of both
        # operands avoids an explicit transpose of k.
        s = lax.dot_general(q.astype(jnp.bfloat16), k.astype(jnp.bfloat16),
                            (((1,), (1,)), ((), ())),
                            preferred_element_type=jnp.float32)           # (BT, BT)
        s = s + bias                     # block-diag mask: cross-batch -> -1e30

        m = jnp.max(s, axis=-1, keepdims=True)
        e = jnp.exp(s - m)               # masked entries underflow to exactly 0
        p = e * pl.reciprocal(jnp.sum(e, axis=-1, keepdims=True), approx=True)

        heads.append(jnp.dot(p.astype(jnp.bfloat16), v.astype(jnp.bfloat16),
                             preferred_element_type=jnp.float32))          # (BT, HS)

    # Single lane-concat of head outputs, then one fused output projection.
    o_all = jnp.concatenate(heads, axis=-1).astype(jnp.bfloat16)           # (BT, D)

    w_out = out_pack_ref[:d_attn, :]                    # (D, C) bf16
    b_out = out_pack_ref[d_attn:d_attn + 1, :]          # (1, C) bf16
    o_ref[...] = jnp.dot(o_all, w_out, preferred_element_type=jnp.float32) + b_out


def rwkv_tiny_attn(x, mask, wqkv, bqkv, wout, bout):
    Bsz, Tlen, C = x.shape
    d_attn = wqkv.shape[0] // 3
    head_size = d_attn // N_HEAD
    scale = 1.0 / math.sqrt(head_size)
    BT = Bsz * Tlen

    # ---- wrapper-side (constant) weight plumbing ----------------------------
    # Fold the 1/sqrt(head_size) scale into the q slice of the weights/bias.
    lane_scale = jnp.concatenate([jnp.full((d_attn,), scale, jnp.float32),
                                  jnp.ones((2 * d_attn,), jnp.float32)])
    wqkv_t = wqkv.T * lane_scale[None, :]               # (C, 3*D)
    bqkv_s = bqkv * lane_scale                          # (3*D,)

    # Pack weights + bias rows (2 operands instead of 8); bf16 for the MXU.
    qkv_pack = jnp.concatenate([wqkv_t, bqkv_s[None, :]],
                               axis=0).astype(jnp.bfloat16)          # (C+1, 3*D)
    out_pack = jnp.concatenate([wout.T, bout[None, :]],
                               axis=0).astype(jnp.bfloat16)          # (D+1, C)

    # Block-diagonal additive mask over the flattened (B*T) axis:
    # within-batch entries follow `mask`, cross-batch entries are masked.
    # Large finite negative (not -inf) so a fully-masked row stays NaN-free.
    block = jnp.kron(jnp.eye(Bsz, dtype=mask.dtype), mask)           # (BT, BT)
    bias = jnp.where(block == 0, jnp.float32(-1e30), jnp.float32(0.0))

    x2 = x.reshape(BT, C).astype(jnp.bfloat16)

    # Single grid-less invocation; everything fits in one VMEM step.
    # TODO(synk): for production B*T / T, add a "parallel" grid over BT tiles
    # (megacore on v7x) and online-softmax T-tiling instead of the dense
    # (BT,BT) score slab.
    y2 = pl.pallas_call(
        tiny_attn_kernel,
        out_shape=jax.ShapeDtypeStruct((BT, C), jnp.float32),
    )(x2, bias, qkv_pack, out_pack)
    return y2.reshape(Bsz, Tlen, C)


def reference(x, mask, wqkv, bqkv, wout, bout):
    """Pure-JAX port of the PyTorch forward, for validation (f32)."""
    Bsz, Tlen, C = x.shape
    qkv = x @ wqkv.T + bqkv
    q, k, v = jnp.split(qkv, 3, axis=-1)
    q = q.reshape(Bsz, Tlen, N_HEAD, HEAD_SIZE).transpose(0, 2, 1, 3)
    k = k.reshape(Bsz, Tlen, N_HEAD, HEAD_SIZE).transpose(0, 2, 1, 3)
    v = v.reshape(Bsz, Tlen, N_HEAD, HEAD_SIZE).transpose(0, 2, 1, 3)
    s = (q @ jnp.swapaxes(k, -2, -1)) * (1.0 / math.sqrt(HEAD_SIZE))
    s = jnp.where(mask[None, None] == 0, -jnp.inf, s)
    p = jax.nn.softmax(s, axis=-1)
    o = (p @ v).transpose(0, 2, 1, 3).reshape(Bsz, Tlen, -1)
    return o @ wout.T + bout


if __name__ == "__main__":
    key = jax.random.PRNGKey(0)
    kx, kw1, kb1, kw2, kb2 = jax.random.split(key, 5)

    # deterministic parameter init (nn.Linear shapes)
    wqkv = jax.random.normal(kw1, (3 * D_ATTN, N_EMBD), jnp.float32) * 0.02
    bqkv = jax.random.normal(kb1, (3 * D_ATTN,), jnp.float32) * 0.02
    wout = jax.random.normal(kw2, (N_EMBD, D_ATTN), jnp.float32) * 0.02
    bout = jax.random.normal(kb2, (N_EMBD,), jnp.float32) * 0.02

    # inputs
    x = jax.random.normal(kx, (B, T, N_EMBD), jnp.float32)
    mask = jnp.tril(jnp.ones((T, T), jnp.float32))   # causal mask, 0 => masked

    y = rwkv_tiny_attn(x, mask, wqkv, bqkv, wout, bout)
    jax.block_until_ready(y)

    y_ref = reference(x, mask, wqkv, bqkv, wout, bout)
    # tolerance allows for bf16 MXU operands + EUP approximate reciprocal
    assert jnp.allclose(y, y_ref, atol=5e-3, rtol=2e-2), "mismatch vs reference"

    print("KERNEL_OK")
</pallas_src>

<mosaic_0001>
module attributes {stable_mosaic.version = 11 : i64} {
  func.func @tiny_attn_kernel(%arg0: memref<16x32xbf16, #tpu.memory_space<vmem>>, %arg1: memref<16x16xf32, #tpu.memory_space<vmem>>, %arg2: memref<33x48xbf16, #tpu.memory_space<vmem>>, %arg3: memref<17x32xbf16, #tpu.memory_space<vmem>>, %arg4: memref<16x32xf32, #tpu.memory_space<vmem>>) attributes {dimension_semantics = [], scalar_prefetch = 0 : i64, scratch_operands = 0 : i64, tpu.core_type = #tpu.core_type<tc>} {
    %c0 = arith.constant 0 : index
    %c0_0 = arith.constant 0 : index
    %0 = vector.load %arg0[%c0, %c0_0] : memref<16x32xbf16, #tpu.memory_space<vmem>>, vector<16x32xbf16>
    %c0_1 = arith.constant 0 : index
    %c0_2 = arith.constant 0 : index
    %1 = vector.load %arg1[%c0_1, %c0_2] : memref<16x16xf32, #tpu.memory_space<vmem>>, vector<16x16xf32>
    %c0_3 = arith.constant 0 : index
    %c0_4 = arith.constant 0 : index
    %2 = vector.load %arg2[%c0_3, %c0_4] : memref<33x48xbf16, #tpu.memory_space<vmem>>, vector<32x48xbf16>
    %c32 = arith.constant 32 : index
    %c0_5 = arith.constant 0 : index
    %3 = vector.load %arg2[%c32, %c0_5] : memref<33x48xbf16, #tpu.memory_space<vmem>>, vector<1x48xbf16>
    %cst = arith.constant dense<0.000000e+00> : vector<16x48xf32>
    %4 = tpu.matmul %0, %2, %cst {dimension_numbers = #tpu.dot_dimension_numbers<[1], [0], [0], [1], [0, 0, 1, 1], [], []>} : vector<16x32xbf16>, vector<32x48xbf16>, vector<16x48xf32> -> vector<16x48xf32>
    %5 = arith.extf %3 : vector<1x48xbf16> to vector<1x48xf32>
    %6 = vector.broadcast %5 : vector<1x48xf32> to vector<16x48xf32>
    %7 = arith.addf %4, %6 : vector<16x48xf32>
    %8 = vector.extract_strided_slice %7 {offsets = [0, 0], sizes = [16, 8], strides = [1, 1]} : vector<16x48xf32> to vector<16x8xf32>
    %9 = vector.extract_strided_slice %7 {offsets = [0, 16], sizes = [16, 8], strides = [1, 1]} : vector<16x48xf32> to vector<16x8xf32>
    %10 = vector.extract_strided_slice %7 {offsets = [0, 32], sizes = [16, 8], strides = [1, 1]} : vector<16x48xf32> to vector<16x8xf32>
    %11 = arith.truncf %8 : vector<16x8xf32> to vector<16x8xbf16>
    %12 = arith.truncf %9 : vector<16x8xf32> to vector<16x8xbf16>
    %cst_6 = arith.constant dense<0.000000e+00> : vector<16x16xf32>
    %13 = tpu.matmul %11, %12, %cst_6 {dimension_numbers = #tpu.dot_dimension_numbers<[1], [1], [0], [0], [0, 0, 1, 0], [], []>} : vector<16x8xbf16>, vector<16x8xbf16>, vector<16x16xf32> -> vector<16x16xf32>
    %14 = arith.addf %13, %1 : vector<16x16xf32>
    %cst_7 = arith.constant dense<0xFF800000> : vector<16xf32>
    %15 = vector.multi_reduction <maximumf>, %14, %cst_7 [1] : vector<16x16xf32> to vector<16xf32>
    %16 = vector.shape_cast %15 : vector<16xf32> to vector<16x1xf32>
    %17 = vector.broadcast %16 : vector<16x1xf32> to vector<16x16xf32>
    %18 = arith.subf %14, %17 : vector<16x16xf32>
    %19 = math.exp %18 : vector<16x16xf32>
    %cst_8 = arith.constant dense<0.000000e+00> : vector<16xf32>
    %20 = vector.multi_reduction <add>, %19, %cst_8 [1] : vector<16x16xf32> to vector<16xf32>
    %21 = vector.shape_cast %20 : vector<16xf32> to vector<16x1xf32>
    %22 = tpu.reciprocal %21 {approx = true} : vector<16x1xf32> -> vector<16x1xf32>
    %23 = vector.broadcast %22 : vector<16x1xf32> to vector<16x16xf32>
    %24 = arith.mulf %19, %23 : vector<16x16xf32>
    %25 = arith.truncf %24 : vector<16x16xf32> to vector<16x16xbf16>
    %26 = arith.truncf %10 : vector<16x8xf32> to vector<16x8xbf16>
    %cst_9 = arith.constant dense<0.000000e+00> : vector<16x8xf32>
    %27 = tpu.matmul %25, %26, %cst_9 {dimension_numbers = #tpu.dot_dimension_numbers<[1], [0], [0], [1], [0, 0, 1, 1], [], []>} : vector<16x16xbf16>, vector<16x8xbf16>, vector<16x8xf32> -> vector<16x8xf32>
    %28 = vector.extract_strided_slice %7 {offsets = [0, 8], sizes = [16, 8], strides = [1, 1]} : vector<16x48xf32> to vector<16x8xf32>
    %29 = vector.extract_strided_slice %7 {offsets = [0, 24], sizes = [16, 8], strides = [1, 1]} : vector<16x48xf32> to vector<16x8xf32>
    %30 = vector.extract_strided_slice %7 {offsets = [0, 40], sizes = [16, 8], strides = [1, 1]} : vector<16x48xf32> to vector<16x8xf32>
    %31 = arith.truncf %28 : vector<16x8xf32> to vector<16x8xbf16>
    %32 = arith.truncf %29 : vector<16x8xf32> to vector<16x8xbf16>
    %cst_10 = arith.constant dense<0.000000e+00> : vector<16x16xf32>
    %33 = tpu.matmul %31, %32, %cst_10 {dimension_numbers = #tpu.dot_dimension_numbers<[1], [1], [0], [0], [0, 0, 1, 0], [], []>} : vector<16x8xbf16>, vector<16x8xbf16>, vector<16x16xf32> -> vector<16x16xf32>
    %34 = arith.addf %33, %1 : vector<16x16xf32>
    %cst_11 = arith.constant dense<0xFF800000> : vector<16xf32>
    %35 = vector.multi_reduction <maximumf>, %34, %cst_11 [1] : vector<16x16xf32> to vector<16xf32>
    %36 = vector.shape_cast %35 : vector<16xf32> to vector<16x1xf32>
    %37 = vector.broadcast %36 : vector<16x1xf32> to vector<16x16xf32>
    %38 = arith.subf %34, %37 : vector<16x16xf32>
    %39 = math.exp %38 : vector<16x16xf32>
    %cst_12 = arith.constant dense<0.000000e+00> : vector<16xf32>
    %40 = vector.multi_reduction <add>, %39, %cst_12 [1] : vector<16x16xf32> to vector<16xf32>
    %41 = vector.shape_cast %40 : vector<16xf32> to vector<16x1xf32>
    %42 = tpu.reciprocal %41 {approx = true} : vector<16x1xf32> -> vector<16x1xf32>
    %43 = vector.broadcast %42 : vector<16x1xf32> to vector<16x16xf32>
    %44 = arith.mulf %39, %43 : vector<16x16xf32>
    %45 = arith.truncf %44 : vector<16x16xf32> to vector<16x16xbf16>
    %46 = arith.truncf %30 : vector<16x8xf32> to vector<16x8xbf16>
    %cst_13 = arith.constant dense<0.000000e+00> : vector<16x8xf32>
    %47 = tpu.matmul %45, %46, %cst_13 {dimension_numbers = #tpu.dot_dimension_numbers<[1], [0], [0], [1], [0, 0, 1, 1], [], []>} : vector<16x16xbf16>, vector<16x8xbf16>, vector<16x8xf32> -> vector<16x8xf32>
    %48 = tpu.concatenate %27, %47 in 1 : vector<16x8xf32>, vector<16x8xf32> -> vector<16x16xf32>
    %49 = arith.truncf %48 : vector<16x16xf32> to vector<16x16xbf16>
    %c0_14 = arith.constant 0 : index
    %c0_15 = arith.constant 0 : index
    %50 = vector.load %arg3[%c0_14, %c0_15] : memref<17x32xbf16, #tpu.memory_space<vmem>>, vector<16x32xbf16>
    %c16 = arith.constant 16 : index
    %c0_16 = arith.constant 0 : index
    %51 = vector.load %arg3[%c16, %c0_16] : memref<17x32xbf16, #tpu.memory_space<vmem>>, vector<1x32xbf16>
    %cst_17 = arith.constant dense<0.000000e+00> : vector<16x32xf32>
    %52 = tpu.matmul %49, %50, %cst_17 {dimension_numbers = #tpu.dot_dimension_numbers<[1], [0], [0], [1], [0, 0, 1, 1], [], []>} : vector<16x16xbf16>, vector<16x32xbf16>, vector<16x32xf32> -> vector<16x32xf32>
    %53 = arith.extf %51 : vector<1x32xbf16> to vector<1x32xf32>
    %54 = vector.broadcast %53 : vector<1x32xf32> to vector<16x32xf32>
    %55 = arith.addf %52, %54 : vector<16x32xf32>
    %c0_18 = arith.constant 0 : index
    %c0_19 = arith.constant 0 : index
    %56 = vector.load %arg4[%c0_18, %c0_19] : memref<16x32xf32, #tpu.memory_space<vmem>>, vector<16x32xf32>
    tpu.vector_store %arg4[%c0_18, %c0_19], %55 {strides = array<i32>} : memref<16x32xf32, #tpu.memory_space<vmem>>, vector<16x32xf32>,
    return
  }
}

</mosaic_0001>

<bundles_post_ra>
// kernel: tpu_custom_call.1
= control target key start
LH: loop header
LB: loop body
LE: loop exit
PB: predicated region body
PF: predicated region fallthrough
CT: control target
= control target key end

     0   :  { %9 = vsyncpa [#allocation3], 0  ;;  %s882_s0 = inlined_call_operand.hbm [shape: bf16[16,32], index: 0, kind: input, shape index: {}]   ;;  %s883_s1 = inlined_call_operand.hbm [shape: f32[16,16], index: 1, kind: input, shape index: {}]   ;;  %s884_s2 = inlined_call_operand.hbm [shape: bf16[33,48], index: 2, kind: input, shape index: {}]   ;;  %s885_s3 = inlined_call_operand.hbm [shape: bf16[17,32], index: 3, kind: input, shape index: {}]   ;;  %s886_s4 = inlined_call_operand.hbm [shape: f32[16,32], index: 4, kind: output, shape index: {}]  }
   0x1   :  { %10 = vsyncpa [#allocation6], 0 }
   0x2   :  { %11 = vsyncpa [#allocation9], 0 }
   0x3   :  { %12 = vsyncpa [#allocation4], 0  ;;  %s704_s15 = smov [#allocation5]   ;;  %s586_s19 = scalar_lea.hbm %s883_s1, 256 }
   0x4   :  { %s30_s16 = sshll.u32 %s704_s15, 4  ;;  %p587_p0 = scmp.ne.s32.totalorder %s883_s1, %s586_s19  ;;  %s31_s16 = int_to_ptr.vmem [resolvable:$true] %s30_s16 }
   0x5   :  { %p590_p1 = scmp.lt.u32.totalorder %s586_s19, %s883_s1 }
   0x7   :  { %p592_p2 = pnand %p590_p1, %p587_p0 }
   0x9   :  { %595 = shalt.err (!%p592_p2)
}
   0xa   :  { %s596_s24 = scalar_lea.vmem %s31_s16, 256  ;;  %p601_p4 = scmp.lt.s32.totalorder %s31_s16, %s31_s16 }
   0xb   :  { %p597_p3 = scmp.ne.s32.totalorder %s31_s16, %s596_s24  ;;  %p602_p5 = scmp.lt.s32.totalorder %s596_s24, %s596_s24 }
   0xd   :  { %p603_p6 = por %p602_p5, %p601_p4 }
   0xf   :  { %p604_p7 = pnand %p603_p6, %p597_p3 }
  0x11   :  { %607 = shalt.err (!%p604_p7)
}
  0x12   :  { %s705_s25 = smov 128   ;;  %s706_s26 = smov 8  }
  0x13   :  { %36 = dma.hbm_to_vmem [thread:$0]  %s883_s1, 256, %s31_s16, [#allocation6], %s705_s25, %s705_s25, %s706_s26  }
  0x14   :  { %s707_s29 = smov [#allocation2]   ;;  %s608_s7 = scalar_lea.hbm %s882_s0, 128 }
  0x15   :  { %s18_s30 = sshll.u32 %s707_s29, 4  ;;  %p609_p8 = scmp.ne.s32.totalorder %s882_s0, %s608_s7  ;;  %s19_s30 = int_to_ptr.vmem [resolvable:$true] %s18_s30 }
  0x16   :  { %p612_p9 = scmp.lt.u32.totalorder %s608_s7, %s882_s0 }
  0x18   :  { %p614_p10 = pnand %p612_p9, %p609_p8 }
  0x1a   :  { %617 = shalt.err (!%p614_p10)
}
  0x1b   :  { %s618_s12 = scalar_lea.vmem %s19_s30, 128  ;;  %p623_p12 = scmp.lt.s32.totalorder %s19_s30, %s19_s30 }
  0x1c   :  { %p619_p11 = scmp.ne.s32.totalorder %s19_s30, %s618_s12  ;;  %p624_p13 = scmp.lt.s32.totalorder %s618_s12, %s618_s12 }
  0x1e   :  { %p625_p0 = por %p624_p13, %p623_p12 }
  0x20   :  { %p626_p1 = pnand %p625_p0, %p619_p11 }
  0x22   :  { %629 = shalt.err (!%p626_p1)
}
  0x23   :  { %s708_s1 = smov 64   ;;  %s709_s13 = smov 4  }
  0x24   :  { %24 = dma.hbm_to_vmem [thread:$0]  %s882_s0, 128, %s19_s30, [#allocation3], %s708_s1, %s708_s1, %s709_s13  }
  0x25   :  { %s710_s16 = smov [#allocation7]   ;;  %s711_s18 = smov [#allocation8]  }
  0x26   :  { %s42_s17 = sshll.u32 %s710_s16, 4  ;;  %s54_s19 = sshll.u32 %s711_s18, 4  ;;  %s43_s17 = int_to_ptr.vmem [resolvable:$true] %s42_s17  ;;  %s775_s19 = int_to_ptr.vmem [resolvable:$true] %s54_s19 }
  0x27   :  { %s630_s22 = scalar_lea.hbm %s884_s2, 320 }
  0x28   :  { %p631_p2 = scmp.ne.s32.totalorder %s884_s2, %s630_s22  ;;  %p634_p3 = scmp.lt.u32.totalorder %s630_s22, %s884_s2 }
  0x2a   :  { %p636_p4 = pnand %p634_p3, %p631_p2 }
  0x2c   :  { %639 = shalt.err (!%p636_p4)
}
  0x2d   :  { %s640_s0 = scalar_lea.vmem %s43_s17, 320  ;;  %p645_p6 = scmp.lt.s32.totalorder %s43_s17, %s43_s17 }
  0x2e   :  { %p641_p5 = scmp.ne.s32.totalorder %s43_s17, %s640_s0  ;;  %p646_p7 = scmp.lt.s32.totalorder %s640_s0, %s640_s0 }
  0x30   :  { %p647_p8 = por %p646_p7, %p645_p6 }
  0x32   :  { %p648_p9 = pnand %p647_p8, %p641_p5 }
  0x34   :  { %651 = shalt.err (!%p648_p9)
}
  0x35   :  { %48 = dma.hbm_to_vmem [thread:$0]  %s884_s2, 320, %s43_s17, [#allocation6], %s708_s1, %s708_s1, %s709_s13  }
  0x36   :  { %s652_s7 = scalar_lea.hbm %s885_s3, 192 }
  0x37   :  { %p653_p10 = scmp.ne.s32.totalorder %s885_s3, %s652_s7  ;;  %p656_p11 = scmp.lt.u32.totalorder %s652_s7, %s885_s3 }
  0x39   :  { %p658_p12 = pnand %p656_p11, %p653_p10 }
  0x3b   :  { %661 = shalt.err (!%p658_p12)
}
  0x3c   :  { %s662_s12 = scalar_lea.vmem %s775_s19, 192  ;;  %p667_p0 = scmp.lt.s32.totalorder %s775_s19, %s775_s19 }
  0x3d   :  { %p663_p13 = scmp.ne.s32.totalorder %s775_s19, %s662_s12  ;;  %p668_p1 = scmp.lt.s32.totalorder %s662_s12, %s662_s12 }
  0x3f   :  { %p669_p2 = por %p668_p1, %p667_p0 }
  0x41   :  { %p670_p3 = pnand %p669_p2, %p663_p13 }
  0x43   :  { %673 = shalt.err (!%p670_p3)
}
  0x44   :  { %60 = dma.hbm_to_vmem [thread:$0]  %s885_s3, 192, %s775_s19, [#allocation9], %s708_s1, %s708_s1, %s709_s13  }
  0x45   :  { %696 = dma.done.wait [#allocation3], 128  }
  0x46   :  { %697 = vsyncadd [#allocation3], 4294967168 }
  0x47   :  { %698 = dma.done.wait [#allocation6], 576  }
  0x48   :  { %699 = vsyncadd [#allocation6], 4294966720 }
  0x49   :  { %700 = dma.done.wait [#allocation9], 192  }
  0x4a   :  { %701 = vsyncadd [#allocation9], 4294967104  ;;  %v712_v0 = vmov 0.0   ;;  %vm713_vm0 = vmmov 0   ;;  %v566_v1 = vld [vmem:[#allocation7] sm:$0xff]   ;;  %v567_v2 = vld [vmem:[#allocation7 + $0x8] sm:$0xff]   ;;  %v84_v4 = vlaneseq }
  0x4b   :  { %507 = vmatprep.subr.bf16.mxu0 %v712_v0  ;;  %511 = vmatprep.mubr.msk.bf16.mxu0 %vm713_vm0, %v712_v0  ;;  %v568_v3 = vld [vmem:[#allocation2] sm:$0xff]   ;;  %vm105_vm1 = vcmask 261120   ;;  %v82_v6 = vld [vmem:[#allocation7 + $0x10] sm:$0x1]  ;;  %s714_s3 = smov 120   ;;  %s715_s1 = smov 112  }
  0x4c   :  { %515 = vmatprep.subr.bf16.mxu1 %v712_v0  ;;  %517 = vmatprep.mubr.msk.bf16.mxu1 %vm713_vm0, %v712_v0  ;;  %v823_v5 = vshrl.u32 %v84_v4, 7  ;;  %v83_v7 = vunpack.c.l.bf16 %v82_v6  ;;  %s716_s13 = smov 104   ;;  %vm154_vm2 = vcmask 64512   ;;  %v76_v22 = vld [vmem:[#allocation5] sm:$0xff]  ;;  %v77_v24 = vld [vmem:[#allocation5 + $0x8] sm:$0xff]  ;;  %vm202_vm3 = vcmask 130048  }
  0x4d   :  { %508 = vmatpush3.bf16.msra.mxu0 %v566_v1  ;;  %s717_s15 = smov 88   ;;  %s718_s16 = smov 96  }
  0x4e   :  { %509 = vmatprep.subr.bf16.mxu0 %v712_v0  ;;  %v86_v8 = vsub.s32 0, %v823_v5  ;;  %s719_s17 = smov [#allocation10]  }
  0x4f   :  { %s470_s18 = sshll.u32 %s719_s17, 4  ;;  %s471_s18 = int_to_ptr.vmem [resolvable:$true] %s470_s18 }
  0x50   :  { %v87_v9 = vrot.slane %v83_v7, %v86_v8  ;;  %s674_s19 = scalar_lea.vmem %s471_s18, 256  ;;  %p679_p5 = scmp.lt.s32.totalorder %s471_s18, %s471_s18 }
  0x51   :  { %510 = vmatpush3.bf16.msra.mxu0 %v567_v2  ;;  %p675_p4 = scmp.ne.s32.totalorder %s471_s18, %s674_s19  ;;  %p680_p6 = scmp.lt.s32.totalorder %s674_s19, %s674_s19 }
  0x52   :  { %521 = vmatprep.subr.bf16.mxu0 %v712_v0 }
  0x53   :  { %p681_p7 = por %p680_p6, %p679_p5 }
  0x54   :  { %512 = vmatmul.mubr.msk.bf16.vlgmr.msra.gmra.mrb[0].mxu0 %vm105_vm1, %v568_v3 }
  0x55   :  { %523 = vmatprep.mubr.msk.bf16.mxu0 %vm713_vm0, %v712_v0  ;;  %p682_p8 = pnand %p681_p7, %p675_p4 }
 0x127   :  { %v143_v10 = vpop.f32.mrb[0].mxu0 }
 0x128   :  { %v513_v11 = vpop.f32.mrb[1].mxu0  ;;  %v144_v13 = vadd.f32 %v143_v10, %v87_v9 }
 0x129   :  { %v146_v12 = vpop.f32.mrb[2].mxu0 }
 0x12a   :  { %v147_v14 = vadd.f32 %v146_v12, %v87_v9  ;;  %v514_v15 = vpop.f32.mrb[3].mxu0 }
 0x12c   :  { %v828_v16 = vpack.c.bf16 %v147_v14, %v144_v13 }
 0x12e   :  { %273 = vrot.lane.b32.xlu1 %v828_v16, %s714_s3  ;;  %152 = vrot.lane.b32.xlu0 %v828_v16, %s715_s1 }
 0x132   :  { %275 = vrot.lane.b32.xlu0 %v828_v16, %s716_s13 }
 0x1a0   :  { %v153_v17 = vpop.permute.xlu0 %152  ;;  %v274_v21 = vpop.permute.xlu1 %273 }
 0x1a1   :  { %v159_v18 = vsel %vm154_vm2, %v153_v17, 0  ;;  %v569_v17 = vld [vmem:[#allocation8] sm:$0xff]  }
 0x1a2   :  { %516 = vmatpush3.bf16.xpose.msra.mxu1 %v159_v18 }
 0x1a3   :  { %527 = vmatprep.subr.bf16.mxu1 %v712_v0 }
 0x1a4   :  { %v276_v19 = vpop.permute.xlu0 %275 }
 0x1a5   :  { %v281_v20 = vsel %vm154_vm2, %v276_v19, 0 }
 0x1a9   :  { %518 = vmatmul.mubr.msk.bf16.vlgmr.msra.gmra.mrb[0].mxu1 %vm154_vm2, %v828_v16 }
 0x1aa   :  { %528 = vmatpush3.bf16.xpose.msra.mxu1 %v281_v20  ;;  %529 = vmatprep.mubr.msk.bf16.mxu1 %vm713_vm0, %v712_v0 }
 0x1ab   :  { %539 = vmatprep.subr.bf16.mxu1 %v712_v0 }
 0x1b1   :  { %530 = vmatmul.mubr.msk.bf16.vlgmr.msra.gmra.mrb[4].mxu1 %vm154_vm2, %v274_v21 }
 0x1b2   :  { %541 = vmatprep.mubr.msk.bf16.mxu1 %vm713_vm0, %v712_v0  ;;  %540 = vmatpush3.bf16.msra.mxu1 %v569_v17 }
 0x27c   :  { %v195_v23 = vpop.f32.mrb[0].mxu1 }
 0x27d   :  { %v196_v25 = vadd.f32 %v195_v23, %v76_v22  ;;  %v519_v26 = vpop.f32.mrb[1].mxu1 }
 0x27e   :  { %v198_v27 = vpop.f32.mrb[2].mxu1 }
 0x27f   :  { %v199_v28 = vadd.f32 %v198_v27, %v77_v24  ;;  %v520_v29 = vpop.f32.mrb[3].mxu1  ;;  %v203_v30 = vsel %vm202_vm3, %v196_v25, -inf }
 0x280   :  { %204 = vmax.xlane.f32.xlu1 %v203_v30  ;;  %v407_v30 = vld [vmem:[#allocation8 + $0x8] sm:$0x1] }
 0x281   :  { %v206_v31 = vsel %vm202_vm3, %v199_v28, -inf }
 0x282   :  { %207 = vmax.xlane.f32.xlu0 %v206_v31  ;;  %v408_v31 = vunpack.c.l.bf16 %v407_v30 }
 0x284   :  { %v317_v32 = vpop.f32.mrb[4].mxu1 }
 0x285   :  { %v318_v33 = vadd.f32 %v317_v32, %v76_v22  ;;  %v531_v34 = vpop.f32.mrb[5].mxu1  ;;  %v412_v32 = vrot.slane %v408_v31, %v86_v8 }
 0x286   :  { %v320_v35 = vpop.f32.mrb[6].mxu1 }
 0x287   :  { %v321_v36 = vadd.f32 %v320_v35, %v77_v24  ;;  %v532_v37 = vpop.f32.mrb[7].mxu1  ;;  %v324_v38 = vsel %vm202_vm3, %v318_v33, -inf }
 0x288   :  { %325 = vmax.xlane.f32.xlu0 %v324_v38 }
 0x289   :  { %v327_v39 = vsel %vm202_vm3, %v321_v36, -inf }
 0x28a   :  { %328 = vmax.xlane.f32.xlu1 %v327_v39 }
 0x30d   :  { %v205_v40 = vpop.xlane.xlu1 %204 }
 0x30e   :  { %v209_v41 = vsub.f32 %v196_v25, %v205_v40 }
 0x30f   :  { %v208_v42 = vpop.xlane.xlu0 %207 }
 0x310   :  { %v211_v43 = vmul.f32 1.442695, %v209_v41  ;;  %v210_v44 = vsub.f32 %v199_v28, %v208_v42 }
 0x312   :  { %570 = vpow2.f32 %v211_v43  ;;  %v213_v45 = vmul.f32 1.442695, %v210_v44 }
 0x314   :  { %572 = vpow2.f32 %v213_v45 }
 0x315   :  { %v326_v46 = vpop.xlane.xlu0 %325 }
 0x316   :  { %v330_v47 = vsub.f32 %v318_v33, %v326_v46 }
 0x317   :  { %v329_v48 = vpop.xlane.xlu1 %328 }
 0x318   :  { %v332_v49 = vmul.f32 1.442695, %v330_v47  ;;  %v331_v50 = vsub.f32 %v321_v36, %v329_v48 }
 0x31a   :  { %574 = vpow2.f32 %v332_v49  ;;  %v334_v51 = vmul.f32 1.442695, %v331_v50 }
 0x31c   :  { %v571_v52 = vpop.eup %570  ;;  %576 = vpow2.f32 %v334_v51 }
 0x31d   :  { %v215_v53 = vsel %vm202_vm3, %v571_v52, 0.0 }
 0x31e   :  { %v573_v54 = vpop.eup %572  ;;  %216 = vadd.xlane.f32.xlu0 %v215_v53 }
 0x31f   :  { %v218_v55 = vsel %vm202_vm3, %v573_v54, 0.0 }
 0x320   :  { %219 = vadd.xlane.f32.xlu1 %v218_v55 }
 0x324   :  { %v575_v56 = vpop.eup %574 }
 0x325   :  { %v336_v57 = vsel %vm202_vm3, %v575_v56, 0.0 }
 0x326   :  { %v577_v58 = vpop.eup %576  ;;  %337 = vadd.xlane.f32.xlu0 %v336_v57 }
 0x327   :  { %v339_v59 = vsel %vm202_vm3, %v577_v58, 0.0 }
 0x328   :  { %340 = vadd.xlane.f32.xlu1 %v339_v59 }
 0x339   :  { %347 = vrot.lane.b32.xlu1 %v828_v16, %s717_s15 }
 0x33c   :  { %226 = vrot.lane.b32.xlu0 %v828_v16, %s718_s16 }
 0x3ab   :  { %v217_v60 = vpop.xlane.xlu0 %216 }
 0x3ac   :  { %578 = vrcp.f32 %v217_v60 }
 0x3ad   :  { %v220_v61 = vpop.xlane.xlu1 %219 }
 0x3ae   :  { %580 = vrcp.f32 %v220_v61 }
 0x3b3   :  { %v338_v62 = vpop.xlane.xlu0 %337 }
 0x3b4   :  { %582 = vrcp.f32 %v338_v62 }
 0x3b5   :  { %v341_v63 = vpop.xlane.xlu1 %340 }
 0x3b6   :  { %v579_v1 = vpop.eup %578  ;;  %584 = vrcp.f32 %v341_v63 }
 0x3b7   :  { %v227_v2 = vpop.permute.xlu0 %226  ;;  %v223_v4 = vmul.f32 %v579_v1, %v571_v52 }
 0x3b8   :  { %v581_v3 = vpop.eup %580  ;;  %522 = vmatpush3.bf16.msra.mxu0 %v227_v2 }
 0x3b9   :  { %v224_v6 = vmul.f32 %v581_v3, %v573_v54  ;;  %533 = vmatprep.subr.bf16.mxu0 %v712_v0  ;;  %v348_v9 = vpop.permute.xlu1 %347 }
 0x3bb   :  { %v225_v7 = vpack.c.bf16 %v224_v6, %v223_v4 }
 0x3bd   :  { %524 = vmatmul.mubr.msk.bf16.vlgmr.msra.gmra.mrb[4].mxu0 %vm202_vm3, %v225_v7 }
 0x3be   :  { %v583_v10 = vpop.eup %582  ;;  %534 = vmatpush3.bf16.msra.mxu0 %v348_v9  ;;  %535 = vmatprep.mubr.msk.bf16.mxu0 %vm713_vm0, %v712_v0 }
 0x3bf   :  { %v344_v12 = vmul.f32 %v583_v10, %v575_v56 }
 0x3c0   :  { %v585_v11 = vpop.eup %584 }
 0x3c1   :  { %v345_v13 = vmul.f32 %v585_v11, %v577_v58 }
 0x3c3   :  { %v346_v14 = vpack.c.bf16 %v345_v13, %v344_v12 }
 0x3c5   :  { %536 = vmatmul.mubr.msk.bf16.vlgmr.msra.gmra.mrb[8].mxu0 %vm202_vm3, %v346_v14 }
 0x490   :  { %v266_v15 = vpop.f32.mrb[4].mxu0 }
 0x491   :  { %v525_v16 = vpop.f32.mrb[5].mxu0 }
 0x492   :  { %v269_v18 = vpop.f32.mrb[6].mxu0 }
 0x493   :  { %v526_v19 = vpop.f32.mrb[7].mxu0 }
 0x498   :  { %v387_v20 = vpop.f32.mrb[8].mxu0 }
 0x499   :  { %v537_v21 = vpop.f32.mrb[9].mxu0 }
 0x49a   :  { %v390_v22 = vpop.f32.mrb[10].mxu0 }
 0x49b   :  { %v561_v23 = vpack.i.bf16 %v390_v22, %v387_v20  ;;  %v538_v24 = vpop.f32.mrb[11].mxu0 }
 0x49d   :  { %562 = vrot.lane.b32.xlu1 %v561_v23, %s706_s26 }
 0x50f   :  { %v563_v0 = vpop.permute.xlu1 %562 }
 0x510   :  { %v565_v25 = vunpack.i.h.bf16 %v563_v0  ;;  %v564_v26 = vunpack.i.l.bf16 %v563_v0 }
 0x512   :  { %v403_v27 = vsel %vm154_vm2, %v269_v18, %v565_v25  ;;  %v402_v28 = vsel %vm154_vm2, %v266_v15, %v564_v26 }
 0x513   :  { %v404_v29 = vpack.c.bf16 %v403_v27, %v402_v28 }
 0x515   :  { %542 = vmatmul.mubr.msk.bf16.vlgmr.msra.gmra.mrb[8].mxu1 %vm202_vm3, %v404_v29 }
 0x5e8   :  { %v456_v33 = vpop.f32.mrb[8].mxu1 }
 0x5e9   :  { %v457_v34 = vadd.f32 %v456_v33, %v412_v32  ;;  %v543_v35 = vpop.f32.mrb[9].mxu1 }
 0x5ea   :  { %v459_v36 = vpop.f32.mrb[10].mxu1 }
 0x5eb   :  { %463 = vst.msk [vmem:[#allocation10] sm:$0xff] %vm105_vm1, %v457_v34  ;;  %v460_v37 = vadd.f32 %v459_v36, %v412_v32  ;;  %v544_v38 = vpop.f32.mrb[11].mxu1 }
 0x5ed   :  { %464 = vst.msk [vmem:[#allocation10 + $0x8] sm:$0xff] %vm105_vm1, %v460_v37 }
 0x5ee   :  { %685 = shalt.err (!%p682_p8)
}
 0x5ef   :  { %s686_s22 = scalar_lea.hbm %s886_s4, 256 }
 0x5f0   :  { %p687_p9 = scmp.ne.s32.totalorder %s886_s4, %s686_s22  ;;  %p690_p10 = scmp.lt.u32.totalorder %s686_s22, %s886_s4 }
 0x5f2   :  { %p692_p11 = pnand %p690_p10, %p687_p9 }
 0x5f4   :  { %695 = shalt.err (!%p692_p11)
}
 0x5f5   :  { %476 = dma.vmem_to_hbm [thread:$0]  %s471_s18, 256, %s886_s4, [#allocation4], %s705_s25, %s705_s25, %s706_s26  }
 0x5f6   :  { %702 = dma.done.wait [#allocation4], 256  }
 0x5f7   :  { %703 = vsyncadd [#allocation4], 4294967040 }
 0x5f8   :  { %480 = vsyncpa [#allocation3], 1 }
 0x5f9   :  { %481 = vsyncpa [#allocation6], 1 }
 0x5fa   :  { %482 = vsyncpa [#allocation9], 1 }
 0x5fb   :  { %483 = vsyncpa [#allocation4], 1 }

</bundles_post_ra>
